<compile_context>
chip_gen: v6e
topology: v6e:2x2x1
jax: 0.10.0
libtpu: 0.0.40
codegen_flags: <defaults>
</compile_context>

<pallas_src>
import jax
import jax.numpy as jnp
from jax.experimental import pallas as pl
from jax.experimental.pallas import tpu as pltpu

_MIB = 1024 * 1024


def _round_up(n, m):
    return ((n + m - 1) // m) * m


def _sublane_pack(dtype):
    # 32-bit dtypes pack 8 rows per vreg sublane group, 16-bit -> 16, 8-bit -> 32.
    itemsize = jnp.dtype(dtype).itemsize
    return max(8, 32 // max(1, itemsize))


def _vmem_budgets():
    """(streaming_budget_bytes, vmem_limit_bytes), generation-aware."""
    try:
        cap = pltpu.get_tpu_info().vmem_capacity_bytes
    except Exception:
        cap = None
    if cap is None:
        # Conservative fallback (safe on every generation, incl. 64 MiB v7x).
        return 32 * _MIB, 48 * _MIB
    if cap <= 64 * _MIB:
        # v7x: 64 MiB physical per TC -> keep total comfortably below it.
        return 40 * _MIB, 56 * _MIB
    # v5e / v6e: 128 MiB physical -> keep the streamed x tile large.
    return 64 * _MIB, 96 * _MIB


def _choose_batch_tile(B, H, out_features, dtype, stream_budget_bytes):
    """Largest sublane-packed batch tile whose double-buffered in+out tiles fit."""
    itemsize = jnp.dtype(dtype).itemsize
    pack = _sublane_pack(dtype)
    # Per-row VMEM cost: lane dim pads to a multiple of 128 for both x and out.
    per_row = (_round_up(H, 128) + _round_up(out_features, 128)) * itemsize
    cap_rows = max(pack, stream_budget_bytes // (2 * per_row))   # double-buffered
    cap_rows = max(pack, (cap_rows // pack) * pack)
    # Never bigger than the (packed) batch itself.
    tb = min(cap_rows, _round_up(B, pack))
    # Keep >=2 grid steps when the batch allows it so the "parallel" axis can be
    # sharded across both v7x TensorCores (harmless extra step elsewhere).
    if B > pack:
        tb = min(tb, max(pack, _round_up(pl.cdiv(B, 2), pack)))
    return max(pack, (tb // pack) * pack)


def _bpe_head_kernel(x_ref, w_ref, b_ref, o_ref):
    # x: [TB, H]; w: [H, OUT] (MXU-native, VMEM-resident); b: [1, OUT]
    acc = jnp.dot(x_ref[...], w_ref[...], preferred_element_type=jnp.float32)
    o_ref[...] = (acc + b_ref[...]).astype(o_ref.dtype)


def bpe_head(x, weight, bias):
    """Forward of BPEHead: x @ weight.T + bias.

    x:      [B, H]
    weight: [OUT, H]   (PyTorch nn.Linear layout, OUT = 2)
    bias:   [OUT]
    returns [B, OUT]
    """
    B, H = x.shape
    out_features = weight.shape[0]
    itemsize = jnp.dtype(x.dtype).itemsize

    stream_budget, vmem_limit = _vmem_budgets()
    tb = _choose_batch_tile(B, H, out_features, x.dtype, stream_budget)
    grid = (pl.cdiv(B, tb),)

    # One-time layout plumbing in the wrapper: MXU-native [H, OUT] weight and
    # 2-D bias for a clean broadcast inside the kernel.
    w_t = weight.T
    b2d = bias.reshape(1, out_features)

    flops = 2 * B * H * out_features
    bytes_accessed = (
        B * H * itemsize                    # x streamed once (no pad path)
        + H * out_features * itemsize       # weight (resident, read once)
        + out_features * itemsize           # bias
        + B * out_features * itemsize       # output
    )

    return pl.pallas_call(
        _bpe_head_kernel,
        out_shape=jax.ShapeDtypeStruct((B, out_features), x.dtype),
        grid=grid,
        in_specs=[
            # x streams over the batch grid axis (double-buffered by Pallas).
            pl.BlockSpec((tb, H), lambda i: (i, 0)),
            # weight / bias: constant block index -> VMEM-resident across grid.
            pl.BlockSpec((H, out_features), lambda i: (0, 0)),
            pl.BlockSpec((1, out_features), lambda i: (0, 0)),
        ],
        out_specs=pl.BlockSpec((tb, out_features), lambda i: (i, 0)),
        compiler_params=pltpu.CompilerParams(
            dimension_semantics=("parallel",),
            vmem_limit_bytes=vmem_limit,
        ),
        cost_estimate=pl.CostEstimate(
            flops=flops, transcendentals=0, bytes_accessed=bytes_accessed
        ),
    )(x, w_t, b2d)


if __name__ == "__main__":
    # Small shapes consistent with the module: batch=8, hidden=32, out=2.
    B, H = 8, 32
    OUT = 2

    key = jax.random.PRNGKey(0)
    kx, kw, kb = jax.random.split(key, 3)

    x = jax.random.normal(kx, (B, H), dtype=jnp.float32)

    # Deterministic parameter init mimicking nn.Linear default:
    # U(-1/sqrt(H), 1/sqrt(H)) for both weight and bias.
    bound = 1.0 / (H ** 0.5)
    weight = jax.random.uniform(kw, (OUT, H), jnp.float32, -bound, bound)
    bias = jax.random.uniform(kb, (OUT,), jnp.float32, -bound, bound)

    out = bpe_head(x, weight, bias)
    out = jax.block_until_ready(out)

    # Reference check against plain JAX (same math as the PyTorch forward).
    ref = x @ weight.T + bias
    assert out.shape == (B, OUT)
    assert jnp.allclose(out, ref, atol=1e-5, rtol=1e-5)

    print("KERNEL_OK")
</pallas_src>

<mosaic_0001>
module attributes {stable_mosaic.version = 11 : i64} {
  func.func @_bpe_head_kernel(%arg0: i32, %arg1: memref<8x32xf32, #tpu.memory_space<vmem>>, %arg2: memref<32x2xf32, #tpu.memory_space<vmem>>, %arg3: memref<1x2xf32, #tpu.memory_space<vmem>>, %arg4: memref<8x2xf32, #tpu.memory_space<vmem>>) attributes {dimension_semantics = [#tpu.dimension_semantics<parallel>], iteration_bounds = array<i64: 1>, scalar_prefetch = 0 : i64, scratch_operands = 0 : i64, tpu.core_type = #tpu.core_type<tc>, window_params = [{transform_indices = @transform_0, window_bounds = array<i64: 8, 32>}, {pipeline_mode = #tpu.pipeline_mode<synchronous>, transform_indices = @transform_1, window_bounds = array<i64: 32, 2>}, {pipeline_mode = #tpu.pipeline_mode<synchronous>, transform_indices = @transform_2, window_bounds = array<i64: 1, 2>}, {transform_indices = @transform_3, window_bounds = array<i64: 8, 2>}]} {
    %c0 = arith.constant 0 : index
    %c0_0 = arith.constant 0 : index
    %0 = vector.load %arg1[%c0, %c0_0] : memref<8x32xf32, #tpu.memory_space<vmem>>, vector<8x32xf32>
    %c0_1 = arith.constant 0 : index
    %c0_2 = arith.constant 0 : index
    %1 = vector.load %arg2[%c0_1, %c0_2] : memref<32x2xf32, #tpu.memory_space<vmem>>, vector<32x2xf32>
    %cst = arith.constant dense<0.000000e+00> : vector<8x2xf32>
    %2 = tpu.matmul %0, %1, %cst {dimension_numbers = #tpu.dot_dimension_numbers<[1], [0], [0], [1], [0, 0, 1, 1], [], []>} : vector<8x32xf32>, vector<32x2xf32>, vector<8x2xf32> -> vector<8x2xf32>
    %c0_3 = arith.constant 0 : index
    %c0_4 = arith.constant 0 : index
    %3 = vector.load %arg3[%c0_3, %c0_4] : memref<1x2xf32, #tpu.memory_space<vmem>>, vector<1x2xf32>
    %4 = vector.broadcast %3 : vector<1x2xf32> to vector<8x2xf32>
    %5 = arith.addf %2, %4 : vector<8x2xf32>
    %c0_5 = arith.constant 0 : index
    %c0_6 = arith.constant 0 : index
    %6 = vector.load %arg4[%c0_5, %c0_6] : memref<8x2xf32, #tpu.memory_space<vmem>>, vector<8x2xf32>
    tpu.vector_store %arg4[%c0_5, %c0_6], %5 {strides = array<i32>} : memref<8x2xf32, #tpu.memory_space<vmem>>, vector<8x2xf32>,
    return
  }
  func.func @transform_0(%arg0: i32) -> (i32, i32) {
    %c0_i32 = arith.constant 0 : i32
    %c0_i32_0 = arith.constant 0 : i32
    return %arg0, %c0_i32 : i32, i32
  }
  func.func @transform_1(%arg0: i32) -> (i32, i32) {
    %c0_i32 = arith.constant 0 : i32
    %c0_i32_0 = arith.constant 0 : i32
    %c0_i32_1 = arith.constant 0 : i32
    return %c0_i32, %c0_i32_0 : i32, i32
  }
  func.func @transform_2(%arg0: i32) -> (i32, i32) {
    %c0_i32 = arith.constant 0 : i32
    %c0_i32_0 = arith.constant 0 : i32
    %c0_i32_1 = arith.constant 0 : i32
    return %c0_i32, %c0_i32_0 : i32, i32
  }
  func.func @transform_3(%arg0: i32) -> (i32, i32) {
    %c0_i32 = arith.constant 0 : i32
    %c0_i32_0 = arith.constant 0 : i32
    return %arg0, %c0_i32 : i32, i32
  }
}

</mosaic_0001>

<bundles_post_ra>
// kernel: tpu_custom_call.1
= control target key start
LH: loop header
LB: loop body
LE: loop exit
PB: predicated region body
PF: predicated region fallthrough
CT: control target
= control target key end

     0   :  { %v126_v0 = vmov 0.0   ;;  %vm127_vm0 = vmmov 0   ;;  %vm26_vm1 = vcmask 261120   ;;  %vm100_vm2 = vcmask 15360   ;;  %s169_s1 = inlined_call_operand.vmem [shape: f32[32,2], index: 1, kind: input, shape index: {}]   ;;  %s170_s0 = inlined_call_operand.vmem [shape: f32[8,32], index: 0, kind: input, shape index: {}]   ;;  %s171_s2 = inlined_call_operand.vmem [shape: f32[1,2], index: 2, kind: input, shape index: {}]   ;;  %s172_s3 = inlined_call_operand.vmem [shape: f32[8,2], index: 3, kind: output, shape index: {}]  }
   0x1   :  { %113 = vmatprep.subr.mxu0 %v126_v0  ;;  %v18_v1 = vld [vmem:[%s169_s1 + $0x18] sm:$0xff]  ;;  %v17_v2 = vld [vmem:[%s169_s1 + $0x10] sm:$0xff]  ;;  %121 = vmatprep.mubr.msk.f32.mxu0 %vm127_vm0, %v126_v0  ;;  %v16_v3 = vld [vmem:[%s169_s1 + $0x8] sm:$0xff] }
   0x2   :  { %114 = vmatpush3.msra.mxu0 %v18_v1  ;;  %v15_v4 = vld [vmem:[%s169_s1] sm:$0xff] }
   0x3   :  { %115 = vmatprep.subr.mxu0 %v126_v0  ;;  %v14_v5 = vld [vmem:[%s170_s0] sm:$0xff] }
   0x4   :  { %116 = vmatpush3.msra.mxu0 %v17_v2  ;;  %v106_v6 = vld [vmem:[%s171_s2] ss:$0 sm:$0xff] }
   0x5   :  { %117 = vmatprep.subr.mxu0 %v126_v0 }
   0x6   :  { %118 = vmatpush3.msra.mxu0 %v16_v3 }
   0x7   :  { %119 = vmatprep.subr.mxu0 %v126_v0 }
   0x8   :  { %120 = vmatpush3.msra.mxu0 %v15_v4 }
   0x9   :  { %122 = vmatmul.mubr.msk.f32.vlgmr.msra.gmra.mxu0 %vm26_vm1, %v14_v5 }
  0xc9   :  { %v96_v7 = vpop.f32.mrf.mxu0 }
  0xca   :  { %v97_v8 = vadd.f32 %v106_v6, %v96_v7 }
  0xcb   :  { %v123_v9 = vpop.f32.mrf.mxu0 }
  0xcc   :  { %101 = vst.msk [vmem:[%s172_s3] sm:$0xff] %vm100_vm2, %v97_v8 }

</bundles_post_ra>
